<compile_context>
chip_gen: v5e
topology: v5e:2x2
jax: 0.10.0
libtpu: 0.0.40
codegen_flags: <defaults>
</compile_context>

<pallas_src>
import functools

import jax
import jax.numpy as jnp
from jax import lax
from jax.experimental import pallas as pl
from jax.experimental.pallas import tpu as pltpu


# 48 MiB: leaves headroom on v7x (64 MiB physical VMEM per TensorCore) while
# still allowing large tiles; well under v5e/v6e's 128 MiB.
_VMEM_LIMIT_BYTES = 48 * 1024 * 1024


def _round_up(x, m):
    return (x + m - 1) // m * m


def _pick_tile(dim, candidates):
    """Return (tile, padded_dim) for a matmul axis.

    Prefers the largest candidate that divides `dim`; small dims become a
    single full-dim block (always layout-legal); otherwise the dim is padded
    up to a multiple of the candidate minimizing padding waste.
    """
    for t in candidates:                       # candidates are descending
        if t <= dim and dim % t == 0:
            return t, dim
    if dim < candidates[-1]:
        return dim, dim                        # single full-dim block
    best = None
    for t in candidates:
        if t > dim:
            continue
        pad = _round_up(dim, t) - dim
        if best is None or pad < best[1]:
            best = (t, pad)
    t, pad = best
    return t, dim + pad


def _pick_seq_tile(dim, candidates):
    """Sequence-axis tile for attention (no padding: would require masking)."""
    for t in candidates:
        if t <= dim and dim % t == 0:
            return t
    # TODO(synk): pad + score masking for ragged / non-divisible seq lengths.
    return dim


def _pad_to(x, shape):
    pads = [(0, s - d) for d, s in zip(x.shape, shape)]
    if all(p == (0, 0) for p in pads):
        return x
    return jnp.pad(x, pads)


# ---------------------------------------------------------------------------
# Tiled linear: out = x @ w + b   (bias added once at the K-finalize step)
# ---------------------------------------------------------------------------
def _linear_kernel(x_ref, w_ref, b_ref, o_ref, acc_ref):
    k = pl.program_id(2)

    @pl.when(k == 0)
    def _():
        acc_ref[...] = jnp.zeros_like(acc_ref)

    acc_ref[...] += jnp.dot(
        x_ref[...], w_ref[...], preferred_element_type=jnp.float32
    )

    @pl.when(k == pl.num_programs(2) - 1)
    def _():
        o_ref[...] = (acc_ref[...] + b_ref[...]).astype(o_ref.dtype)


def pallas_linear(x, w, b, *, out_dtype=jnp.float32):
    """x: (M, K), w: (K, N), b: (N,) -> (M, N)."""
    M, K = x.shape
    K2, N = w.shape
    assert K == K2

    tm, Mp = _pick_tile(M, (512, 256, 128))
    tn, Np = _pick_tile(N, (512, 256, 128))
    tk, Kp = _pick_tile(K, (1024, 512, 256, 128))

    xp = _pad_to(x, (Mp, Kp))
    wp = _pad_to(w, (Kp, Np))
    bp = _pad_to(b.reshape(1, N).astype(jnp.float32), (1, Np))

    grid = (Mp // tm, Np // tn, Kp // tk)

    out = pl.pallas_call(
        _linear_kernel,
        out_shape=jax.ShapeDtypeStruct((Mp, Np), out_dtype),
        grid_spec=pltpu.PrefetchScalarGridSpec(
            num_scalar_prefetch=0,
            grid=grid,
            in_specs=[
                pl.BlockSpec((tm, tk), lambda i, j, k: (i, k)),
                pl.BlockSpec((tk, tn), lambda i, j, k: (k, j)),
                pl.BlockSpec((1, tn), lambda i, j, k: (0, j)),
            ],
            out_specs=pl.BlockSpec((tm, tn), lambda i, j, k: (i, j)),
            scratch_shapes=[pltpu.VMEM((tm, tn), jnp.float32)],
        ),
        compiler_params=pltpu.CompilerParams(
            dimension_semantics=("parallel", "parallel", "arbitrary"),
            vmem_limit_bytes=_VMEM_LIMIT_BYTES,
        ),
    )(xp, wp, bp)

    if (Mp, Np) != (M, N):
        out = out[:M, :N]
    return out


# ---------------------------------------------------------------------------
# Flash attention: grid = (b_s, h, nq_tiles, nk_tiles); online softmax with
# running max / denominator / accumulator in VMEM scratch.  The 1/sqrt(d_k)
# scale is assumed already folded into Q.
# ---------------------------------------------------------------------------
def _flash_attn_kernel(q_ref, k_ref, v_ref, o_ref, m_ref, l_ref, acc_ref):
    kv = pl.program_id(3)

    @pl.when(kv == 0)
    def _():
        m_ref[...] = jnp.full_like(m_ref, -jnp.inf)
        l_ref[...] = jnp.zeros_like(l_ref)
        acc_ref[...] = jnp.zeros_like(acc_ref)

    q = q_ref[0, 0]          # (tq, d_k)
    k = k_ref[0, 0]          # (tk, d_k)
    v = v_ref[0, 0]          # (tk, d_v)

    # scores = q @ k^T expressed as a contraction (no explicit transpose).
    s = lax.dot_general(
        q, k, (((1,), (1,)), ((), ())), preferred_element_type=jnp.float32
    )                                                       # (tq, tk), f32

    m_prev = m_ref[...]
    m_new = jnp.maximum(m_prev, jnp.max(s, axis=-1, keepdims=True))
    alpha = jnp.exp(m_prev - m_new)
    p = jnp.exp(s - m_new)

    l_ref[...] = alpha * l_ref[...] + jnp.sum(p, axis=-1, keepdims=True)
    acc_ref[...] = alpha * acc_ref[...] + jnp.dot(
        p.astype(v.dtype), v, preferred_element_type=jnp.float32
    )
    m_ref[...] = m_new

    @pl.when(kv == pl.num_programs(3) - 1)
    def _():
        # Normalize once on the (tq, d_v) result, not the (tq, tk) p matrix.
        o_ref[0, 0] = (
            acc_ref[...] * pl.reciprocal(l_ref[...], approx=True)
        ).astype(o_ref.dtype)


def pallas_flash_attention(q, k, v, *, out_dtype=None):
    """q: (b_s, h, nq, d_k), k: (b_s, h, nk, d_k), v: (b_s, h, nk, d_v)
    -> (b_s, h, nq, d_v).  1/sqrt(d_k) must already be folded into q."""
    b_s, h, nq, d_k = q.shape
    nk, d_v = v.shape[2], v.shape[3]
    out_dtype = out_dtype or q.dtype

    tq = _pick_seq_tile(nq, (256, 128))
    tk = _pick_seq_tile(nk, (512, 256, 128))
    grid = (b_s, h, nq // tq, nk // tk)

    return pl.pallas_call(
        _flash_attn_kernel,
        out_shape=jax.ShapeDtypeStruct((b_s, h, nq, d_v), out_dtype),
        grid_spec=pltpu.PrefetchScalarGridSpec(
            num_scalar_prefetch=0,
            grid=grid,
            in_specs=[
                pl.BlockSpec((1, 1, tq, d_k), lambda b, hh, qi, ki: (b, hh, qi, 0)),
                pl.BlockSpec((1, 1, tk, d_k), lambda b, hh, qi, ki: (b, hh, ki, 0)),
                pl.BlockSpec((1, 1, tk, d_v), lambda b, hh, qi, ki: (b, hh, ki, 0)),
            ],
            out_specs=pl.BlockSpec(
                (1, 1, tq, d_v), lambda b, hh, qi, ki: (b, hh, qi, 0)
            ),
            scratch_shapes=[
                pltpu.VMEM((tq, 1), jnp.float32),    # running max m
                pltpu.VMEM((tq, 1), jnp.float32),    # running denom l
                pltpu.VMEM((tq, d_v), jnp.float32),  # running accumulator
            ],
        ),
        compiler_params=pltpu.CompilerParams(
            dimension_semantics=("parallel", "parallel", "parallel", "arbitrary"),
            vmem_limit_bytes=_VMEM_LIMIT_BYTES,
        ),
    )(q, k, v)


# ---------------------------------------------------------------------------
# Parameters (matches the module's init_weights: weight ~ N(0, 0.001), bias 0).
# Weights stored as (in_features, out_features) [transposed vs torch].
# ---------------------------------------------------------------------------
def init_mha_params(key, d_model, d_k, d_v, h):
    k1, k2, k3, k4 = jax.random.split(key, 4)
    std = 0.001
    return {
        "wq": jax.random.normal(k1, (d_model, h * d_k), jnp.float32) * std,
        "bq": jnp.zeros((h * d_k,), jnp.float32),
        "wk": jax.random.normal(k2, (d_model, h * d_k), jnp.float32) * std,
        "bk": jnp.zeros((h * d_k,), jnp.float32),
        "wv": jax.random.normal(k3, (d_model, h * d_v), jnp.float32) * std,
        "bv": jnp.zeros((h * d_v,), jnp.float32),
        "wo": jax.random.normal(k4, (h * d_v, d_model), jnp.float32) * std,
        "bo": jnp.zeros((d_model,), jnp.float32),
    }


def prepare_mha_params(params, d_k, compute_dtype=jnp.bfloat16):
    """Fold 1/sqrt(d_k) into the Q projection; cast matmul weights to the MXU
    compute dtype (bf16). Biases stay f32 (added in the f32 accumulator)."""
    scale = 1.0 / jnp.sqrt(jnp.float32(d_k))
    return {
        "wq": (params["wq"] * scale).astype(compute_dtype),
        "bq": (params["bq"] * scale).astype(jnp.float32),
        "wk": params["wk"].astype(compute_dtype),
        "bk": params["bk"].astype(jnp.float32),
        "wv": params["wv"].astype(compute_dtype),
        "bv": params["bv"].astype(jnp.float32),
        "wo": params["wo"].astype(compute_dtype),
        "bo": params["bo"].astype(jnp.float32),
    }


# ---------------------------------------------------------------------------
# Module forward.
# ---------------------------------------------------------------------------
def multihead_attention(params, queries, keys, values, d_k, d_v, h,
                        compute_dtype=jnp.bfloat16):
    """queries: (b_s, nq, d_model), keys/values: (b_s, nk, d_model)."""
    # TODO(synk): attention_mask / attention_weights and dropout (train mode)
    #             are not implemented (inference path only).
    b_s, nq, d_model = queries.shape
    nk = keys.shape[1]

    qx = queries.reshape(b_s * nq, d_model).astype(compute_dtype)

    if queries is keys and keys is values:
        # Self-attention: fused QKV projection -> activations read once.
        w = jnp.concatenate([params["wq"], params["wk"], params["wv"]], axis=1)
        bb = jnp.concatenate([params["bq"], params["bk"], params["bv"]], axis=0)
        qkv = pallas_linear(qx, w, bb, out_dtype=compute_dtype)
        q = qkv[:, : h * d_k]
        k = qkv[:, h * d_k : 2 * h * d_k]
        v = qkv[:, 2 * h * d_k :]
    else:
        kx = keys.reshape(b_s * nk, d_model).astype(compute_dtype)
        q = pallas_linear(qx, params["wq"], params["bq"], out_dtype=compute_dtype)
        if keys is values:
            # Shared K/V input: fused K|V projection.
            w = jnp.concatenate([params["wk"], params["wv"]], axis=1)
            bb = jnp.concatenate([params["bk"], params["bv"]], axis=0)
            kv = pallas_linear(kx, w, bb, out_dtype=compute_dtype)
            k = kv[:, : h * d_k]
            v = kv[:, h * d_k :]
        else:
            vx = values.reshape(b_s * nk, d_model).astype(compute_dtype)
            k = pallas_linear(kx, params["wk"], params["bk"], out_dtype=compute_dtype)
            v = pallas_linear(vx, params["wv"], params["bv"], out_dtype=compute_dtype)

    # Per-head layout (b_s, h, n, d) -- one fused XLA transpose per tensor,
    # the same data movement the torch reference's permute(0,2,1,3) performs.
    q = q.reshape(b_s, nq, h, d_k).transpose(0, 2, 1, 3)
    k = k.reshape(b_s, nk, h, d_k).transpose(0, 2, 1, 3)
    v = v.reshape(b_s, nk, h, d_v).transpose(0, 2, 1, 3)

    out = pallas_flash_attention(q, k, v, out_dtype=compute_dtype)  # (b_s,h,nq,d_v)

    out = out.transpose(0, 2, 1, 3).reshape(b_s * nq, h * d_v)
    out = pallas_linear(out, params["wo"], params["bo"], out_dtype=jnp.float32)
    return out.reshape(b_s, nq, d_model)


# ---------------------------------------------------------------------------
# Pure-JAX reference (faithful to the torch module, f32 math).
# ---------------------------------------------------------------------------
def reference_mha(params, queries, keys, values, d_k, d_v, h):
    b_s, nq, d_model = queries.shape
    nk = keys.shape[1]
    q = (queries @ params["wq"] + params["bq"]).reshape(b_s, nq, h, d_k)
    k = (keys @ params["wk"] + params["bk"]).reshape(b_s, nk, h, d_k)
    v = (values @ params["wv"] + params["bv"]).reshape(b_s, nk, h, d_v)
    q = q.transpose(0, 2, 1, 3)
    k = k.transpose(0, 2, 1, 3)
    v = v.transpose(0, 2, 1, 3)
    att = jnp.einsum("bhqd,bhkd->bhqk", q, k) / jnp.sqrt(jnp.float32(d_k))
    att = jax.nn.softmax(att, axis=-1)
    out = jnp.einsum("bhqk,bhkd->bhqd", att, v)
    out = out.transpose(0, 2, 1, 3).reshape(b_s, nq, h * d_v)
    return out @ params["wo"] + params["bo"]


if __name__ == "__main__":
    d_model, d_k, d_v, h = 32, 16, 16, 4
    b_s, nq, nk = 2, 8, 8

    key = jax.random.PRNGKey(0)
    kp, kq, kk, kv = jax.random.split(key, 4)

    raw_params = init_mha_params(kp, d_model, d_k, d_v, h)
    params = prepare_mha_params(raw_params, d_k)

    queries = jax.random.normal(kq, (b_s, nq, d_model), jnp.float32)
    keys = jax.random.normal(kk, (b_s, nk, d_model), jnp.float32)
    values = jax.random.normal(kv, (b_s, nk, d_model), jnp.float32)

    # Cross-attention path (separate projections).
    out = multihead_attention(params, queries, keys, values, d_k, d_v, h)
    jax.block_until_ready(out)
    assert out.shape == (b_s, nq, d_model)
    ref = reference_mha(raw_params, queries, keys, values, d_k, d_v, h)
    rel = float(jnp.max(jnp.abs(out - ref)) / (jnp.max(jnp.abs(ref)) + 1e-30))
    assert rel < 5e-2, f"cross-attention mismatch: rel_err={rel}"

    # Self-attention path (fused QKV projection).
    out_s = multihead_attention(params, queries, queries, queries, d_k, d_v, h)
    jax.block_until_ready(out_s)
    assert out_s.shape == (b_s, nq, d_model)
    ref_s = reference_mha(raw_params, queries, queries, queries, d_k, d_v, h)
    rel_s = float(jnp.max(jnp.abs(out_s - ref_s)) / (jnp.max(jnp.abs(ref_s)) + 1e-30))
    assert rel_s < 5e-2, f"self-attention mismatch: rel_err={rel_s}"

    print("KERNEL_OK")
</pallas_src>

<mosaic_0001>
module attributes {stable_mosaic.version = 11 : i64} {
  func.func @_linear_kernel(%arg0: i32, %arg1: i32, %arg2: i32, %arg3: memref<16x32xbf16, #tpu.memory_space<vmem>>, %arg4: memref<32x64xbf16, #tpu.memory_space<vmem>>, %arg5: memref<1x64xf32, #tpu.memory_space<vmem>>, %arg6: memref<16x64xbf16, #tpu.memory_space<vmem>>, %arg7: memref<16x64xf32, #tpu.memory_space<vmem>>) attributes {dimension_semantics = [#tpu.dimension_semantics<parallel>, #tpu.dimension_semantics<parallel>, #tpu.dimension_semantics<arbitrary>], iteration_bounds = array<i64: 1, 1, 1>, scalar_prefetch = 0 : i64, scratch_operands = 1 : i64, tpu.core_type = #tpu.core_type<tc>, window_params = [{transform_indices = @transform_0, window_bounds = array<i64: 16, 32>}, {transform_indices = @transform_1, window_bounds = array<i64: 32, 64>}, {transform_indices = @transform_2, window_bounds = array<i64: 1, 64>}, {transform_indices = @transform_3, window_bounds = array<i64: 16, 64>}]} {
    %c0_i32 = arith.constant 0 : i32
    %0 = arith.cmpi eq, %arg2, %c0_i32 : i32
    %1 = arith.extui %0 : i1 to i32
    %c0_i32_0 = arith.constant 0 : i32
    %2 = arith.cmpi ne, %1, %c0_i32_0 : i32
    scf.if %2 {
      %cst_10 = arith.constant 0.000000e+00 : f32
      %12 = vector.broadcast %cst_10 : f32 to vector<16x64xf32>
      %c0_11 = arith.constant 0 : index
      %c0_12 = arith.constant 0 : index
      %13 = vector.load %arg7[%c0_11, %c0_12] : memref<16x64xf32, #tpu.memory_space<vmem>>, vector<16x64xf32>
      tpu.vector_store %arg7[%c0_11, %c0_12], %12 {strides = array<i32>} : memref<16x64xf32, #tpu.memory_space<vmem>>, vector<16x64xf32>,
    } else {
    }
    %c0 = arith.constant 0 : index
    %c0_1 = arith.constant 0 : index
    %3 = vector.load %arg7[%c0, %c0_1] : memref<16x64xf32, #tpu.memory_space<vmem>>, vector<16x64xf32>
    %c0_2 = arith.constant 0 : index
    %c0_3 = arith.constant 0 : index
    %4 = vector.load %arg3[%c0_2, %c0_3] : memref<16x32xbf16, #tpu.memory_space<vmem>>, vector<16x32xbf16>
    %c0_4 = arith.constant 0 : index
    %c0_5 = arith.constant 0 : index
    %5 = vector.load %arg4[%c0_4, %c0_5] : memref<32x64xbf16, #tpu.memory_space<vmem>>, vector<32x64xbf16>
    %cst = arith.constant dense<0.000000e+00> : vector<16x64xf32>
    %6 = tpu.matmul %4, %5, %cst {dimension_numbers = #tpu.dot_dimension_numbers<[1], [0], [0], [1], [0, 0, 1, 1], [], []>} : vector<16x32xbf16>, vector<32x64xbf16>, vector<16x64xf32> -> vector<16x64xf32>
    %7 = arith.addf %3, %6 : vector<16x64xf32>
    %c0_6 = arith.constant 0 : index
    %c0_7 = arith.constant 0 : index
    %8 = vector.load %arg7[%c0_6, %c0_7] : memref<16x64xf32, #tpu.memory_space<vmem>>, vector<16x64xf32>
    tpu.vector_store %arg7[%c0_6, %c0_7], %7 {strides = array<i32>} : memref<16x64xf32, #tpu.memory_space<vmem>>, vector<16x64xf32>,
    %c0_i32_8 = arith.constant 0 : i32
    %9 = arith.cmpi eq, %arg2, %c0_i32_8 : i32
    %10 = arith.extui %9 : i1 to i32
    %c0_i32_9 = arith.constant 0 : i32
    %11 = arith.cmpi ne, %10, %c0_i32_9 : i32
    scf.if %11 {
      %c0_10 = arith.constant 0 : index
      %c0_11 = arith.constant 0 : index
      %12 = vector.load %arg7[%c0_10, %c0_11] : memref<16x64xf32, #tpu.memory_space<vmem>>, vector<16x64xf32>
      %c0_12 = arith.constant 0 : index
      %c0_13 = arith.constant 0 : index
      %13 = vector.load %arg5[%c0_12, %c0_13] : memref<1x64xf32, #tpu.memory_space<vmem>>, vector<1x64xf32>
      %14 = vector.broadcast %13 : vector<1x64xf32> to vector<16x64xf32>
      %15 = arith.addf %12, %14 : vector<16x64xf32>
      %16 = arith.truncf %15 : vector<16x64xf32> to vector<16x64xbf16>
      %c0_14 = arith.constant 0 : index
      %c0_15 = arith.constant 0 : index
      %17 = vector.load %arg6[%c0_14, %c0_15] : memref<16x64xbf16, #tpu.memory_space<vmem>>, vector<16x64xbf16>
      tpu.vector_store %arg6[%c0_14, %c0_15], %16 {strides = array<i32>} : memref<16x64xbf16, #tpu.memory_space<vmem>>, vector<16x64xbf16>,
    } else {
    }
    return
  }
  func.func @transform_0(%arg0: i32, %arg1: i32, %arg2: i32) -> (i32, i32) {
    %c0_i32 = arith.constant 0 : i32
    return %arg0, %arg2 : i32, i32
  }
  func.func @transform_1(%arg0: i32, %arg1: i32, %arg2: i32) -> (i32, i32) {
    %c0_i32 = arith.constant 0 : i32
    return %arg2, %arg1 : i32, i32
  }
  func.func @transform_2(%arg0: i32, %arg1: i32, %arg2: i32) -> (i32, i32) {
    %c0_i32 = arith.constant 0 : i32
    %c0_i32_0 = arith.constant 0 : i32
    return %c0_i32, %arg1 : i32, i32
  }
  func.func @transform_3(%arg0: i32, %arg1: i32, %arg2: i32) -> (i32, i32) {
    %c0_i32 = arith.constant 0 : i32
    return %arg0, %arg1 : i32, i32
  }
}

</mosaic_0001>

<bundles_post_ra>
// kernel: tpu_custom_call.1
= control target key start
LH: loop header
LB: loop body
LE: loop exit
PB: predicated region body
PF: predicated region fallthrough
CT: control target
= control target key end

     0   :  { %8 = vsyncpa [#allocation4], 0  ;;  %s291_s0 = inlined_call_operand.hbm [shape: bf16[16,32], index: 0, kind: input, shape index: {}]   ;;  %s292_s1 = inlined_call_operand.hbm [shape: bf16[32,64], index: 1, kind: input, shape index: {}]   ;;  %s293_s2 = inlined_call_operand.vmem [shape: f32[1,64], index: 2, kind: input, shape index: {}]   ;;  %s294_s3 = inlined_call_operand.hbm [shape: bf16[16,64], index: 3, kind: output, shape index: {}]  }
   0x1   :  { %9 = vsyncpa [#allocation7], 0 }
   0x2   :  { %10 = vsyncpa [#allocation5], 0  ;;  %s15_s14 = sshll.u32 %s291_s0, 4  ;;  %s240_s15 = smov [#allocation3]   ;;  %s16_s14 = int_to_ptr.hbm [resolvable:$true] %s15_s14 }
   0x3   :  { %s17_s16 = sshll.u32 %s240_s15, 4  ;;  %s28_s19 = sshll.u32 %s292_s1, 4  ;;  %s18_s16 = int_to_ptr.vmem [resolvable:$true] %s17_s16  ;;  %s29_s19 = int_to_ptr.hbm [resolvable:$true] %s28_s19 }
   0x4   :  { %s241_s20 = smov 64   ;;  %s242_s21 = smov 4  }
   0x5   :  { %23 = dma.hbm_to_vmem [thread:$0]  %s16_s14, 128, %s18_s16, [#allocation4], %s241_s20, %s241_s20, %s242_s21  }
   0x6   :  { %s243_s22 = smov [#allocation6]  }
   0x7   :  { %s30_s23 = sshll.u32 %s243_s22, 4  ;;  %s31_s23 = int_to_ptr.vmem [resolvable:$true] %s30_s23 }
   0x8   :  { %36 = dma.hbm_to_vmem [thread:$0]  %s29_s19, 256, %s31_s23, [#allocation7], %s241_s20, %s241_s20, %s242_s21  }
   0x9   :  { %234 = dma.done.wait [#allocation4], 128  }
   0xa   :  { %235 = vsyncadd [#allocation4], 4294967168 }
   0xb   :  { %236 = dma.done.wait [#allocation7], 256  }
   0xc   :  { %237 = vsyncadd [#allocation7], 4294967040  ;;  %vm52_vm0 = vcmask 523264   ;;  %v244_v0 = vmov 0.0   ;;  %v154_v1 = vld [vmem:[#allocation6 + $0x8] sm:$0xff]  ;;  %v153_v2 = vld [vmem:[#allocation6] sm:$0xff] }
   0xd   :  { %53 = vst.msk [vmem:[#allocation2] sm:$0xff] %vm52_vm0, %v244_v0  ;;  %90 = vmatpush.bf16.msra.mxu0 %v154_v1  ;;  %v152_v3 = vld [vmem:[#allocation3] sm:$0xff]  ;;  %vm80_vm1 = vcmask 261120   ;;  %v161_v8 = vld [vmem:[%s293_s2] ss:$0 sm:$0xff]  ;;  %vm116_vm2 = vcmask 519168  }
   0xe   :  { %54 = vst.msk [vmem:[#allocation2 + $0x8] sm:$0xff] %vm52_vm0, %v244_v0  ;;  %s245_s24 = smov [#allocation8]   ;;  %s125_s28 = sshll.u32 %s294_s3, 4  ;;  %s126_s28 = int_to_ptr.hbm [resolvable:$true] %s125_s28 }
   0xf   :  { %s123_s25 = sshll.u32 %s245_s24, 4  ;;  %s124_s25 = int_to_ptr.vmem [resolvable:$true] %s123_s25 }
  0x11   :  { %91 = vmatpush.bf16.msra.mxu0 %v153_v2 }
  0x14   :  { %151 = vmatmul.msk.bf16.vlgmr.msra.gmra.mxu0 %vm80_vm1, %v152_v3  ;;  %v55_v4 = vld [vmem:[#allocation2] sm:$0xff] }
  0x15   :  { %v56_v7 = vld [vmem:[#allocation2 + $0x8] sm:$0xff] }
  0x91   :  { %v93_v5 = vpop.f32.mrf.mxu0 }
  0x92   :  { %v98_v6 = vadd.f32 %v93_v5, %v55_v4 }
  0x94   :  { %101 = vst.msk [vmem:[#allocation2] sm:$0xff] %vm52_vm0, %v98_v6 }
  0x99   :  { %v95_v9 = vpop.f32.mrf.mxu0 }
  0x9a   :  { %v99_v10 = vadd.f32 %v95_v9, %v56_v7 }
  0x9b   :  { %v106_v11 = vld [vmem:[#allocation2] sm:$0xff] }
  0x9c   :  { %102 = vst.msk [vmem:[#allocation2 + $0x8] sm:$0xff] %vm52_vm0, %v99_v10  ;;  %v112_v12 = vadd.f32 %v161_v8, %v106_v11 }
  0x9e   :  { %v114_v13 = vpack.c.bf16 %v112_v12, %v112_v12 }
  0xa0   :  { %117 = vst.msk [vmem:[#allocation8] sm:$0xf] %vm116_vm2, %v114_v13 }
  0xa3   :  { %v107_v14 = vld [vmem:[#allocation2 + $0x8] sm:$0xff] }
  0xa4   :  { %v113_v15 = vadd.f32 %v161_v8, %v107_v14 }
  0xa6   :  { %v115_v16 = vpack.c.bf16 %v113_v15, %v113_v15 }
  0xa8   :  { %118 = vst.msk [vmem:[#allocation8 + $0x4] sm:$0xf] %vm116_vm2, %v115_v16 }
  0xa9   :  { %131 = dma.vmem_to_hbm [thread:$0]  %s124_s25, 128, %s126_s28, [#allocation5], %s241_s20, %s241_s20, %s242_s21  }
  0xaa   :  { %238 = dma.done.wait [#allocation5], 128  }
  0xab   :  { %239 = vsyncadd [#allocation5], 4294967168 }
  0xac   :  { %136 = vsyncpa [#allocation4], 1 }
  0xad   :  { %137 = vsyncpa [#allocation7], 1 }
  0xae   :  { %138 = vsyncpa [#allocation5], 1 }

</bundles_post_ra>
